<compile_context>
chip_gen: v6e
topology: v6e:2x2x1
jax: 0.10.0
libtpu: 0.0.40
codegen_flags: <defaults>
</compile_context>

<pallas_src>
import functools

import jax
import jax.numpy as jnp
from jax.experimental import pallas as pl
from jax.experimental.pallas import tpu as pltpu

INPUT_DIM = 10
LAYER_SIZE = [128, 128, 128]
BN_EPS = 1e-5
LEAKY_SLOPE = 0.01
LANE = 128


def label_encoder_kernel(x_ref, w_ref, vec_ref, out_ref, *, n_hidden):
    """Three (Linear[no bias] -> BN(train) -> LeakyReLU) blocks + fused head.

    x_ref   : (B, 128) f32, input column-padded with zeros (10 -> 128).
    w_ref   : (n_hidden+1, 128, 128) bf16, [w1_padK, w2, w3, w_head_padN].
    vec_ref : (8, 128) f32, rows [g1, be1, g2, be2, g3, be3, b_head, 0].
    out_ref : (B, 128) f32, [mu | logvar | zero-pad].
    """
    h = x_ref[...]                      # f32 activations (v5e-safe VPU path)
    inv_b = 1.0 / x_ref.shape[0]        # static

    for i in range(n_hidden):
        gamma = vec_ref[2 * i:2 * i + 1, :]
        beta = vec_ref[2 * i + 1:2 * i + 2, :]

        # bf16 x bf16 MXU matmul, f32 accumulation.  No bias: exact BN cancel.
        z = jnp.dot(h.astype(jnp.bfloat16), w_ref[i],
                    preferred_element_type=jnp.float32)

        # Single-pass BatchNorm1d training stats: the two sublane reductions
        # are independent (overlap on XLU) instead of mean -> centered -> var.
        s1 = jnp.sum(z, axis=0, keepdims=True) * inv_b          # E[z]
        s2 = jnp.sum(z * z, axis=0, keepdims=True) * inv_b      # E[z^2]
        var = s2 - s1 * s1                                      # biased var
        s = gamma * jax.lax.rsqrt(var + BN_EPS)                 # folded scale
        zn = (z - s1) * s + beta
        h = jnp.where(zn >= 0, zn, LEAKY_SLOPE * zn)            # LeakyReLU

    # Fused mu|logvar head -> one lane-dense (B, 128) store.
    zh = jnp.dot(h.astype(jnp.bfloat16), w_ref[n_hidden],
                 preferred_element_type=jnp.float32)
    zh = zh + vec_ref[2 * n_hidden:2 * n_hidden + 1, :]
    out_ref[...] = zh.astype(out_ref.dtype)


def pack_params(params, latent_dim):
    """One-time packing of the flat PyTorch-ordered parameter list into two
    fat operands: (4, 128, 128) bf16 weights and (8, 128) f32 BN/bias vectors.
    Hidden-layer Linear biases are discarded (exactly cancelled by BN)."""
    n_layers = len(LAYER_SIZE)
    assert 2 * latent_dim <= LANE, "fused head must fit in one 128-lane slab"

    w_blocks = []
    vec_rows = []
    idx = 0
    for _ in range(n_layers):
        w, _b, g, be = params[idx:idx + 4]      # _b cancels under training BN
        idx += 4
        k = w.shape[0]
        w_pad = jnp.pad(w, ((0, LANE - k), (0, 0))) if k < LANE else w
        w_blocks.append(w_pad.astype(jnp.bfloat16))
        vec_rows += [g.reshape(1, -1), be.reshape(1, -1)]

    w_mu, b_mu, w_lv, b_lv = params[idx:idx + 4]
    d2 = 2 * latent_dim
    wh = jnp.concatenate([w_mu, w_lv], axis=1)                       # (128, 2L)
    wh = jnp.pad(wh, ((0, 0), (0, LANE - d2)))                       # N-pad
    w_blocks.append(wh.astype(jnp.bfloat16))

    bh = jnp.concatenate([b_mu.reshape(1, -1), b_lv.reshape(1, -1)], axis=1)
    bh = jnp.pad(bh, ((0, 0), (0, LANE - d2)))
    vec_rows.append(bh)

    rows = [jnp.pad(r, ((0, 0), (0, LANE - r.shape[1]))) for r in vec_rows]
    while len(rows) < 8:                                             # sublane pad
        rows.append(jnp.zeros((1, LANE), jnp.float32))
    vecs = jnp.concatenate(rows, axis=0).astype(jnp.float32)         # (8, 128)

    w_all = jnp.stack(w_blocks, axis=0)                              # (4,128,128)
    return w_all, vecs


def label_encoder_forward(x, packed, latent_dim):
    """x: (B, input_dim) f32, B % 8 == 0. Returns (mu, logvar), (B, latent)."""
    w_all, vecs = packed
    B, k = x.shape
    assert B % 8 == 0, "batch must be a multiple of 8 (f32 sublane alignment)"
    x_pad = jnp.pad(x.astype(jnp.float32), ((0, 0), (0, LANE - k)))

    full = pl.BlockSpec(memory_space=pltpu.VMEM)   # whole arrays VMEM-resident
    kernel = functools.partial(label_encoder_kernel, n_hidden=len(LAYER_SIZE))

    n_mm = len(LAYER_SIZE) + 1
    cost = pl.CostEstimate(
        flops=2 * B * LANE * LANE * n_mm,
        transcendentals=len(LAYER_SIZE) * LANE,          # per-layer rsqrt
        bytes_accessed=(w_all.size * 2 + vecs.size * 4
                        + x_pad.size * 4 + B * LANE * 4))

    out = pl.pallas_call(
        kernel,
        out_shape=jax.ShapeDtypeStruct((B, LANE), jnp.float32),
        in_specs=[full, full, full],
        out_specs=full,
        cost_estimate=cost,
    )(x_pad, w_all, vecs)

    mu = out[:, :latent_dim]
    logvar = out[:, latent_dim:2 * latent_dim]
    return mu, logvar


def init_params(key, input_dim=INPUT_DIM, layer_sizes=LAYER_SIZE, latent_dim=32):
    """Deterministic init mimicking PyTorch defaults (uniform +-1/sqrt(fan_in)).
    Returns a flat f32 list of params in the module's order."""
    params = []
    pre = input_dim
    keys = jax.random.split(key, 2 * (len(layer_sizes) + 2))
    ki = 0
    for pos in layer_sizes:
        bound = 1.0 / (pre ** 0.5)
        w = jax.random.uniform(keys[ki], (pre, pos), jnp.float32, -bound, bound); ki += 1
        b = jax.random.uniform(keys[ki], (1, pos), jnp.float32, -bound, bound); ki += 1
        gamma = jnp.ones((1, pos), jnp.float32)   # BatchNorm1d weight
        beta = jnp.zeros((1, pos), jnp.float32)   # BatchNorm1d bias
        params += [w, b, gamma, beta]
        pre = pos
    bound = 1.0 / (pre ** 0.5)
    w_mu = jax.random.uniform(keys[ki], (pre, latent_dim), jnp.float32, -bound, bound); ki += 1
    b_mu = jax.random.uniform(keys[ki], (1, latent_dim), jnp.float32, -bound, bound); ki += 1
    w_lv = jax.random.uniform(keys[ki], (pre, latent_dim), jnp.float32, -bound, bound); ki += 1
    b_lv = jax.random.uniform(keys[ki], (1, latent_dim), jnp.float32, -bound, bound); ki += 1
    params += [w_mu, b_mu, w_lv, b_lv]
    return params


def reference_forward(x, params):
    """Pure-JAX f32 reference of the module's forward (training-mode BN)."""
    idx = 0
    h = x.astype(jnp.float32)
    for _ in range(len(LAYER_SIZE)):
        w, b, g, be = params[idx:idx + 4]; idx += 4
        z = h @ w + b
        mean = jnp.mean(z, axis=0, keepdims=True)
        var = jnp.mean((z - mean) ** 2, axis=0, keepdims=True)
        zn = (z - mean) / jnp.sqrt(var + BN_EPS) * g + be
        h = jnp.where(zn >= 0, zn, LEAKY_SLOPE * zn)
    w_mu, b_mu, w_lv, b_lv = params[idx:idx + 4]
    return h @ w_mu + b_mu, h @ w_lv + b_lv


if __name__ == "__main__":
    key = jax.random.PRNGKey(0)
    k_x, k_p = jax.random.split(key)

    B = 8
    latent_dim = 32
    x = jax.random.normal(k_x, (B, INPUT_DIM), jnp.float32)
    params = init_params(k_p, latent_dim=latent_dim)
    packed = pack_params(params, latent_dim)      # one-time packing / bf16 cast

    mu, logvar = label_encoder_forward(x, packed, latent_dim)
    mu, logvar = jax.block_until_ready((mu, logvar))

    mu_ref, lv_ref = reference_forward(x, params)
    # bf16 matmul operands + f32 accumulation -> slightly looser tolerance.
    assert mu.shape == (B, latent_dim) and logvar.shape == (B, latent_dim)
    assert jnp.allclose(mu, mu_ref, atol=5e-2, rtol=5e-2)
    assert jnp.allclose(logvar, lv_ref, atol=5e-2, rtol=5e-2)

    print("KERNEL_OK")
</pallas_src>

<mosaic_0001>
module attributes {stable_mosaic.version = 11 : i64} {
  func.func @label_encoder_kernel(%arg0: memref<8x128xf32, #tpu.memory_space<vmem>>, %arg1: memref<4x128x128xbf16, #tpu.memory_space<vmem>>, %arg2: memref<8x128xf32, #tpu.memory_space<vmem>>, %arg3: memref<8x128xf32, #tpu.memory_space<vmem>>) attributes {dimension_semantics = [], scalar_prefetch = 0 : i64, scratch_operands = 0 : i64, tpu.core_type = #tpu.core_type<tc>} {
    %c0 = arith.constant 0 : index
    %c0_0 = arith.constant 0 : index
    %0 = vector.load %arg0[%c0, %c0_0] : memref<8x128xf32, #tpu.memory_space<vmem>>, vector<8x128xf32>
    %c0_1 = arith.constant 0 : index
    %c0_2 = arith.constant 0 : index
    %1 = vector.load %arg2[%c0_1, %c0_2] : memref<8x128xf32, #tpu.memory_space<vmem>>, vector<1x128xf32>
    %c1 = arith.constant 1 : index
    %c0_3 = arith.constant 0 : index
    %2 = vector.load %arg2[%c1, %c0_3] : memref<8x128xf32, #tpu.memory_space<vmem>>, vector<1x128xf32>
    %3 = arith.truncf %0 : vector<8x128xf32> to vector<8x128xbf16>
    %c0_4 = arith.constant 0 : index
    %c0_5 = arith.constant 0 : index
    %c0_6 = arith.constant 0 : index
    %4 = vector.load %arg1[%c0_4, %c0_5, %c0_6] : memref<4x128x128xbf16, #tpu.memory_space<vmem>>, vector<1x128x128xbf16>
    %5 = vector.shape_cast %4 : vector<1x128x128xbf16> to vector<128x128xbf16>
    %cst = arith.constant dense<0.000000e+00> : vector<8x128xf32>
    %6 = tpu.matmul %3, %5, %cst {dimension_numbers = #tpu.dot_dimension_numbers<[1], [0], [0], [1], [0, 0, 1, 1], [], []>} : vector<8x128xbf16>, vector<128x128xbf16>, vector<8x128xf32> -> vector<8x128xf32>
    %cst_7 = arith.constant dense<0.000000e+00> : vector<128xf32>
    %7 = vector.multi_reduction <add>, %6, %cst_7 [0] : vector<8x128xf32> to vector<128xf32>
    %8 = vector.shape_cast %7 : vector<128xf32> to vector<1x128xf32>
    %cst_8 = arith.constant 1.250000e-01 : f32
    %9 = vector.broadcast %cst_8 : f32 to vector<1x128xf32>
    %10 = arith.mulf %8, %9 : vector<1x128xf32>
    %11 = arith.mulf %6, %6 : vector<8x128xf32>
    %cst_9 = arith.constant dense<0.000000e+00> : vector<128xf32>
    %12 = vector.multi_reduction <add>, %11, %cst_9 [0] : vector<8x128xf32> to vector<128xf32>
    %13 = vector.shape_cast %12 : vector<128xf32> to vector<1x128xf32>
    %cst_10 = arith.constant 1.250000e-01 : f32
    %14 = vector.broadcast %cst_10 : f32 to vector<1x128xf32>
    %15 = arith.mulf %13, %14 : vector<1x128xf32>
    %16 = arith.mulf %10, %10 : vector<1x128xf32>
    %17 = arith.subf %15, %16 : vector<1x128xf32>
    %cst_11 = arith.constant 9.99999974E-6 : f32
    %18 = vector.broadcast %cst_11 : f32 to vector<1x128xf32>
    %19 = arith.addf %17, %18 : vector<1x128xf32>
    %20 = math.rsqrt %19 : vector<1x128xf32>
    %21 = arith.mulf %1, %20 : vector<1x128xf32>
    %22 = vector.broadcast %10 : vector<1x128xf32> to vector<8x128xf32>
    %23 = arith.subf %6, %22 : vector<8x128xf32>
    %24 = vector.broadcast %21 : vector<1x128xf32> to vector<8x128xf32>
    %25 = arith.mulf %23, %24 : vector<8x128xf32>
    %26 = vector.broadcast %2 : vector<1x128xf32> to vector<8x128xf32>
    %27 = arith.addf %25, %26 : vector<8x128xf32>
    %cst_12 = arith.constant 0.000000e+00 : f32
    %28 = vector.broadcast %cst_12 : f32 to vector<8x128xf32>
    %29 = arith.cmpf oge, %27, %28 : vector<8x128xf32>
    %cst_13 = arith.constant 0.00999999977 : f32
    %30 = vector.broadcast %cst_13 : f32 to vector<8x128xf32>
    %31 = arith.mulf %30, %27 : vector<8x128xf32>
    %32 = arith.select %29, %27, %31 : vector<8x128xi1>, vector<8x128xf32>
    %c2 = arith.constant 2 : index
    %c0_14 = arith.constant 0 : index
    %33 = vector.load %arg2[%c2, %c0_14] : memref<8x128xf32, #tpu.memory_space<vmem>>, vector<1x128xf32>
    %c3 = arith.constant 3 : index
    %c0_15 = arith.constant 0 : index
    %34 = vector.load %arg2[%c3, %c0_15] : memref<8x128xf32, #tpu.memory_space<vmem>>, vector<1x128xf32>
    %35 = arith.truncf %32 : vector<8x128xf32> to vector<8x128xbf16>
    %c1_16 = arith.constant 1 : index
    %c0_17 = arith.constant 0 : index
    %c0_18 = arith.constant 0 : index
    %36 = vector.load %arg1[%c1_16, %c0_17, %c0_18] : memref<4x128x128xbf16, #tpu.memory_space<vmem>>, vector<1x128x128xbf16>
    %37 = vector.shape_cast %36 : vector<1x128x128xbf16> to vector<128x128xbf16>
    %cst_19 = arith.constant dense<0.000000e+00> : vector<8x128xf32>
    %38 = tpu.matmul %35, %37, %cst_19 {dimension_numbers = #tpu.dot_dimension_numbers<[1], [0], [0], [1], [0, 0, 1, 1], [], []>} : vector<8x128xbf16>, vector<128x128xbf16>, vector<8x128xf32> -> vector<8x128xf32>
    %cst_20 = arith.constant dense<0.000000e+00> : vector<128xf32>
    %39 = vector.multi_reduction <add>, %38, %cst_20 [0] : vector<8x128xf32> to vector<128xf32>
    %40 = vector.shape_cast %39 : vector<128xf32> to vector<1x128xf32>
    %cst_21 = arith.constant 1.250000e-01 : f32
    %41 = vector.broadcast %cst_21 : f32 to vector<1x128xf32>
    %42 = arith.mulf %40, %41 : vector<1x128xf32>
    %43 = arith.mulf %38, %38 : vector<8x128xf32>
    %cst_22 = arith.constant dense<0.000000e+00> : vector<128xf32>
    %44 = vector.multi_reduction <add>, %43, %cst_22 [0] : vector<8x128xf32> to vector<128xf32>
    %45 = vector.shape_cast %44 : vector<128xf32> to vector<1x128xf32>
    %cst_23 = arith.constant 1.250000e-01 : f32
    %46 = vector.broadcast %cst_23 : f32 to vector<1x128xf32>
    %47 = arith.mulf %45, %46 : vector<1x128xf32>
    %48 = arith.mulf %42, %42 : vector<1x128xf32>
    %49 = arith.subf %47, %48 : vector<1x128xf32>
    %cst_24 = arith.constant 9.99999974E-6 : f32
    %50 = vector.broadcast %cst_24 : f32 to vector<1x128xf32>
    %51 = arith.addf %49, %50 : vector<1x128xf32>
    %52 = math.rsqrt %51 : vector<1x128xf32>
    %53 = arith.mulf %33, %52 : vector<1x128xf32>
    %54 = vector.broadcast %42 : vector<1x128xf32> to vector<8x128xf32>
    %55 = arith.subf %38, %54 : vector<8x128xf32>
    %56 = vector.broadcast %53 : vector<1x128xf32> to vector<8x128xf32>
    %57 = arith.mulf %55, %56 : vector<8x128xf32>
    %58 = vector.broadcast %34 : vector<1x128xf32> to vector<8x128xf32>
    %59 = arith.addf %57, %58 : vector<8x128xf32>
    %cst_25 = arith.constant 0.000000e+00 : f32
    %60 = vector.broadcast %cst_25 : f32 to vector<8x128xf32>
    %61 = arith.cmpf oge, %59, %60 : vector<8x128xf32>
    %cst_26 = arith.constant 0.00999999977 : f32
    %62 = vector.broadcast %cst_26 : f32 to vector<8x128xf32>
    %63 = arith.mulf %62, %59 : vector<8x128xf32>
    %64 = arith.select %61, %59, %63 : vector<8x128xi1>, vector<8x128xf32>
    %c4 = arith.constant 4 : index
    %c0_27 = arith.constant 0 : index
    %65 = vector.load %arg2[%c4, %c0_27] : memref<8x128xf32, #tpu.memory_space<vmem>>, vector<1x128xf32>
    %c5 = arith.constant 5 : index
    %c0_28 = arith.constant 0 : index
    %66 = vector.load %arg2[%c5, %c0_28] : memref<8x128xf32, #tpu.memory_space<vmem>>, vector<1x128xf32>
    %67 = arith.truncf %64 : vector<8x128xf32> to vector<8x128xbf16>
    %c2_29 = arith.constant 2 : index
    %c0_30 = arith.constant 0 : index
    %c0_31 = arith.constant 0 : index
    %68 = vector.load %arg1[%c2_29, %c0_30, %c0_31] : memref<4x128x128xbf16, #tpu.memory_space<vmem>>, vector<1x128x128xbf16>
    %69 = vector.shape_cast %68 : vector<1x128x128xbf16> to vector<128x128xbf16>
    %cst_32 = arith.constant dense<0.000000e+00> : vector<8x128xf32>
    %70 = tpu.matmul %67, %69, %cst_32 {dimension_numbers = #tpu.dot_dimension_numbers<[1], [0], [0], [1], [0, 0, 1, 1], [], []>} : vector<8x128xbf16>, vector<128x128xbf16>, vector<8x128xf32> -> vector<8x128xf32>
    %cst_33 = arith.constant dense<0.000000e+00> : vector<128xf32>
    %71 = vector.multi_reduction <add>, %70, %cst_33 [0] : vector<8x128xf32> to vector<128xf32>
    %72 = vector.shape_cast %71 : vector<128xf32> to vector<1x128xf32>
    %cst_34 = arith.constant 1.250000e-01 : f32
    %73 = vector.broadcast %cst_34 : f32 to vector<1x128xf32>
    %74 = arith.mulf %72, %73 : vector<1x128xf32>
    %75 = arith.mulf %70, %70 : vector<8x128xf32>
    %cst_35 = arith.constant dense<0.000000e+00> : vector<128xf32>
    %76 = vector.multi_reduction <add>, %75, %cst_35 [0] : vector<8x128xf32> to vector<128xf32>
    %77 = vector.shape_cast %76 : vector<128xf32> to vector<1x128xf32>
    %cst_36 = arith.constant 1.250000e-01 : f32
    %78 = vector.broadcast %cst_36 : f32 to vector<1x128xf32>
    %79 = arith.mulf %77, %78 : vector<1x128xf32>
    %80 = arith.mulf %74, %74 : vector<1x128xf32>
    %81 = arith.subf %79, %80 : vector<1x128xf32>
    %cst_37 = arith.constant 9.99999974E-6 : f32
    %82 = vector.broadcast %cst_37 : f32 to vector<1x128xf32>
    %83 = arith.addf %81, %82 : vector<1x128xf32>
    %84 = math.rsqrt %83 : vector<1x128xf32>
    %85 = arith.mulf %65, %84 : vector<1x128xf32>
    %86 = vector.broadcast %74 : vector<1x128xf32> to vector<8x128xf32>
    %87 = arith.subf %70, %86 : vector<8x128xf32>
    %88 = vector.broadcast %85 : vector<1x128xf32> to vector<8x128xf32>
    %89 = arith.mulf %87, %88 : vector<8x128xf32>
    %90 = vector.broadcast %66 : vector<1x128xf32> to vector<8x128xf32>
    %91 = arith.addf %89, %90 : vector<8x128xf32>
    %cst_38 = arith.constant 0.000000e+00 : f32
    %92 = vector.broadcast %cst_38 : f32 to vector<8x128xf32>
    %93 = arith.cmpf oge, %91, %92 : vector<8x128xf32>
    %cst_39 = arith.constant 0.00999999977 : f32
    %94 = vector.broadcast %cst_39 : f32 to vector<8x128xf32>
    %95 = arith.mulf %94, %91 : vector<8x128xf32>
    %96 = arith.select %93, %91, %95 : vector<8x128xi1>, vector<8x128xf32>
    %97 = arith.truncf %96 : vector<8x128xf32> to vector<8x128xbf16>
    %c3_40 = arith.constant 3 : index
    %c0_41 = arith.constant 0 : index
    %c0_42 = arith.constant 0 : index
    %98 = vector.load %arg1[%c3_40, %c0_41, %c0_42] : memref<4x128x128xbf16, #tpu.memory_space<vmem>>, vector<1x128x128xbf16>
    %99 = vector.shape_cast %98 : vector<1x128x128xbf16> to vector<128x128xbf16>
    %cst_43 = arith.constant dense<0.000000e+00> : vector<8x128xf32>
    %100 = tpu.matmul %97, %99, %cst_43 {dimension_numbers = #tpu.dot_dimension_numbers<[1], [0], [0], [1], [0, 0, 1, 1], [], []>} : vector<8x128xbf16>, vector<128x128xbf16>, vector<8x128xf32> -> vector<8x128xf32>
    %c6 = arith.constant 6 : index
    %c0_44 = arith.constant 0 : index
    %101 = vector.load %arg2[%c6, %c0_44] : memref<8x128xf32, #tpu.memory_space<vmem>>, vector<1x128xf32>
    %102 = vector.broadcast %101 : vector<1x128xf32> to vector<8x128xf32>
    %103 = arith.addf %100, %102 : vector<8x128xf32>
    %c0_45 = arith.constant 0 : index
    %c0_46 = arith.constant 0 : index
    %104 = vector.load %arg3[%c0_45, %c0_46] : memref<8x128xf32, #tpu.memory_space<vmem>>, vector<8x128xf32>
    tpu.vector_store %arg3[%c0_45, %c0_46], %103 {strides = array<i32>} : memref<8x128xf32, #tpu.memory_space<vmem>>, vector<8x128xf32>,
    return
  }
}

</mosaic_0001>

<bundles_post_ra>
// kernel: tpu_custom_call.1
= control target key start
LH: loop header
LB: loop body
LE: loop exit
PB: predicated region body
PF: predicated region fallthrough
CT: control target
= control target key end

     0   :  { %8 = vsyncpa [#allocation3], 0  ;;  %s976_s0 = inlined_call_operand.hbm [shape: f32[8,128], index: 0, kind: input, shape index: {}]   ;;  %s977_s1 = inlined_call_operand.hbm [shape: bf16[4,128,128], index: 1, kind: input, shape index: {}]   ;;  %s978_s2 = inlined_call_operand.hbm [shape: f32[8,128], index: 2, kind: input, shape index: {}]   ;;  %s979_s3 = inlined_call_operand.hbm [shape: f32[8,128], index: 3, kind: output, shape index: {}]  }
   0x1   :  { %9 = vsyncpa [#allocation6], 0 }
   0x2   :  { %10 = vsyncpa [#allocation4], 0  ;;  %s891_s12 = smov [#allocation5]  }
   0x3   :  { %s26_s13 = sshll.u32 %s891_s12, 4  ;;  %s27_s13 = int_to_ptr.vmem [resolvable:$true] %s26_s13 }
   0x4   :  { %s813_s14 = scalar_lea.vmem %s27_s13, 4096  ;;  %p818_p1 = scmp.lt.s32.totalorder %s27_s13, %s27_s13 }
   0x5   :  { %p814_p0 = scmp.ne.s32.totalorder %s27_s13, %s813_s14  ;;  %p819_p2 = scmp.lt.s32.totalorder %s813_s14, %s813_s14 }
   0x7   :  { %p820_p3 = por %p819_p2, %p818_p1 }
   0x9   :  { %p821_p4 = pnand %p820_p3, %p814_p0 }
   0xb   :  { %824 = shalt.err (!%p821_p4)
}
   0xc   :  { %s892_s15 = smov 64   ;;  %s893_s16 = smov 4  }
   0xd   :  { %32 = dma.hbm_to_vmem [thread:$0]  %s977_s1, 4096, %s27_s13, [#allocation6], %s892_s15, %s892_s15, %s893_s16  }
   0xe   :  { %s894_s19 = smov [#allocation2]   ;;  %s895_s21 = smov [#allocation7]  }
   0xf   :  { %s17_s20 = sshll.u32 %s894_s19, 4  ;;  %s39_s22 = sshll.u32 %s895_s21, 4  ;;  %s18_s20 = int_to_ptr.vmem [resolvable:$true] %s17_s20  ;;  %s40_s22 = int_to_ptr.vmem [resolvable:$true] %s39_s22 }
  0x10   :  { %s833_s23 = scalar_lea.vmem %s18_s20, 128  ;;  %p838_p6 = scmp.lt.s32.totalorder %s18_s20, %s18_s20 }
  0x11   :  { %p834_p5 = scmp.ne.s32.totalorder %s18_s20, %s833_s23  ;;  %p839_p7 = scmp.lt.s32.totalorder %s833_s23, %s833_s23 }
  0x13   :  { %p840_p8 = por %p839_p7, %p838_p6 }
  0x15   :  { %p841_p9 = pnand %p840_p8, %p834_p5 }
  0x17   :  { %844 = shalt.err (!%p841_p9)
}
  0x18   :  { %20 = dma.hbm_to_vmem [thread:$0]  %s976_s0, 128, %s18_s20, [#allocation3]  }
  0x19   :  { %s853_s26 = scalar_lea.vmem %s40_s22, 128  ;;  %p858_p11 = scmp.lt.s32.totalorder %s40_s22, %s40_s22 }
  0x1a   :  { %p854_p10 = scmp.ne.s32.totalorder %s40_s22, %s853_s26  ;;  %p859_p12 = scmp.lt.s32.totalorder %s853_s26, %s853_s26 }
  0x1c   :  { %p860_p13 = por %p859_p12, %p858_p11 }
  0x1e   :  { %p861_p0 = pnand %p860_p13, %p854_p10 }
  0x20   :  { %864 = shalt.err (!%p861_p0)
}
  0x21   :  { %42 = dma.hbm_to_vmem [thread:$0]  %s978_s2, 128, %s40_s22, [#allocation6]  }
  0x22   :  { %885 = dma.done.wait [#allocation3], 128  }
  0x23   :  { %886 = vsyncadd [#allocation3], 4294967168 }
  0x24   :  { %887 = dma.done.wait [#allocation6], 4224  }
  0x25   :  { %888 = vsyncadd [#allocation6], 4294963072  ;;  %v896_v0 = vmov 0.0   ;;  %vm897_vm0 = vmmov 0   ;;  %v767_v1 = vld [vmem:[#allocation5 + $0x38] sm:$0xff]   ;;  %v768_v2 = vld [vmem:[#allocation5 + $0x30] sm:$0xff]   ;;  %v182_v41 = vlaneseq }
  0x26   :  { %679 = vmatprep.subr.bf16.mxu0 %v896_v0  ;;  %695 = vmatprep.mubr.msk.bf16.mxu0 %vm897_vm0, %v896_v0  ;;  %v769_v3 = vld [vmem:[#allocation5 + $0x28] sm:$0xff]   ;;  %v770_v4 = vld [vmem:[#allocation5 + $0x20] sm:$0xff]   ;;  %v771_v5 = vld [vmem:[#allocation5 + $0x18] sm:$0xff]   ;;  %s898_s0 = smov [#allocation8]  }
  0x27   :  { %699 = vmatprep.subr.bf16.mxu1 %v896_v0  ;;  %715 = vmatprep.mubr.msk.bf16.mxu1 %vm897_vm0, %v896_v0  ;;  %v772_v6 = vld [vmem:[#allocation5 + $0x10] sm:$0xff]   ;;  %v773_v7 = vld [vmem:[#allocation5 + $0x8] sm:$0xff]   ;;  %v774_v8 = vld [vmem:[#allocation5] sm:$0xff]   ;;  %v183_v42 = vshrl.u32 %v182_v41, 7  ;;  %s597_s2 = sshll.u32 %s898_s0, 4  ;;  %s598_s2 = int_to_ptr.vmem [resolvable:$true] %s597_s2 }
  0x28   :  { %680 = vmatpush3.bf16.msra.mxu0 %v767_v1  ;;  %v53_v9 = vld [vmem:[#allocation2] sm:$0xff]  ;;  %v776_v12 = vld [vmem:[#allocation5 + $0x70] sm:$0xff]   ;;  %v777_v13 = vld [vmem:[#allocation5 + $0x68] sm:$0xff]   ;;  %s865_s28 = scalar_lea.vmem %s598_s2, 128  ;;  %p870_p2 = scmp.lt.s32.totalorder %s598_s2, %s598_s2 }
  0x29   :  { %681 = vmatprep.subr.bf16.mxu0 %v896_v0  ;;  %v56_v10 = vpack.c.bf16 %v53_v9, %v53_v9  ;;  %v775_v11 = vld [vmem:[#allocation5 + $0x78] sm:$0xff]   ;;  %v778_v14 = vld [vmem:[#allocation5 + $0x60] sm:$0xff]   ;;  %v780_v16 = vld [vmem:[#allocation5 + $0x50] sm:$0xff]   ;;  %v952_v44 = vsub.s32 0, %v183_v42  ;;  %p866_p1 = scmp.ne.s32.totalorder %s598_s2, %s865_s28  ;;  %p871_p3 = scmp.lt.s32.totalorder %s865_s28, %s865_s28 }
  0x2a   :  { %700 = vmatpush3.bf16.msra.mxu1 %v775_v11  ;;  %v779_v15 = vld [vmem:[#allocation5 + $0x58] sm:$0xff]   ;;  %v781_v17 = vld [vmem:[#allocation5 + $0x48] sm:$0xff]   ;;  %v782_v18 = vld [vmem:[#allocation5 + $0x40] sm:$0xff]  }
  0x2b   :  { %701 = vmatprep.subr.bf16.mxu1 %v896_v0  ;;  %v54_v43 = vld [vmem:[#allocation7] sm:$0x1]  ;;  %v615_v49 = vld [vmem:[#allocation7 + $0x1] ss:$0 sm:$0xff]  ;;  %v783_v55 = vld [vmem:[#allocation5 + $0xb8] sm:$0xff]   ;;  %p872_p4 = por %p871_p3, %p870_p2 }
  0x2c   :  { %682 = vmatpush3.bf16.msra.mxu0 %v768_v2  ;;  %v784_v56 = vld [vmem:[#allocation5 + $0xb0] sm:$0xff]   ;;  %v785_v57 = vld [vmem:[#allocation5 + $0xa8] sm:$0xff]   ;;  %v786_v58 = vld [vmem:[#allocation5 + $0xa0] sm:$0xff]  }
  0x2d   :  { %683 = vmatprep.subr.bf16.mxu0 %v896_v0  ;;  %v787_v59 = vld [vmem:[#allocation5 + $0x98] sm:$0xff]   ;;  %v788_v60 = vld [vmem:[#allocation5 + $0x90] sm:$0xff]   ;;  %v789_v61 = vld [vmem:[#allocation5 + $0x88] sm:$0xff]   ;;  %p873_p5 = pnand %p872_p4, %p866_p1 }
  0x2e   :  { %702 = vmatpush3.bf16.msra.mxu1 %v776_v12  ;;  %v790_v62 = vld [vmem:[#allocation5 + $0x80] sm:$0xff]  }
  0x2f   :  { %703 = vmatprep.subr.bf16.mxu1 %v896_v0 }
  0x30   :  { %684 = vmatpush3.bf16.msra.mxu0 %v769_v3 }
  0x31   :  { %685 = vmatprep.subr.bf16.mxu0 %v896_v0 }
  0x32   :  { %704 = vmatpush3.bf16.msra.mxu1 %v777_v13 }
  0x33   :  { %705 = vmatprep.subr.bf16.mxu1 %v896_v0 }
  0x34   :  { %686 = vmatpush3.bf16.msra.mxu0 %v770_v4 }
  0x35   :  { %687 = vmatprep.subr.bf16.mxu0 %v896_v0 }
  0x36   :  { %706 = vmatpush3.bf16.msra.mxu1 %v778_v14 }
  0x37   :  { %707 = vmatprep.subr.bf16.mxu1 %v896_v0 }
  0x38   :  { %688 = vmatpush3.bf16.msra.mxu0 %v771_v5 }
  0x39   :  { %689 = vmatprep.subr.bf16.mxu0 %v896_v0 }
  0x3a   :  { %708 = vmatpush3.bf16.msra.mxu1 %v779_v15 }
  0x3b   :  { %709 = vmatprep.subr.bf16.mxu1 %v896_v0 }
  0x3c   :  { %690 = vmatpush3.bf16.msra.mxu0 %v772_v6 }
  0x3d   :  { %691 = vmatprep.subr.bf16.mxu0 %v896_v0 }
  0x3e   :  { %710 = vmatpush3.bf16.msra.mxu1 %v780_v16 }
  0x3f   :  { %711 = vmatprep.subr.bf16.mxu1 %v896_v0 }
  0x40   :  { %692 = vmatpush3.bf16.msra.mxu0 %v773_v7 }
  0x41   :  { %693 = vmatprep.subr.bf16.mxu0 %v896_v0 }
  0x42   :  { %712 = vmatpush3.bf16.msra.mxu1 %v781_v17 }
  0x43   :  { %713 = vmatprep.subr.bf16.mxu1 %v896_v0 }
  0x44   :  { %694 = vmatpush3.bf16.msra.mxu0 %v774_v8 }
  0x45   :  { %719 = vmatprep.subr.bf16.mxu0 %v896_v0 }
  0x46   :  { %714 = vmatpush3.bf16.msra.mxu1 %v782_v18 }
  0x47   :  { %696 = vmatmul.mubr.bf16.vlgmr.msra.gmra.mxu0 %v56_v10  ;;  %739 = vmatprep.subr.bf16.mxu1 %v896_v0 }
  0x48   :  { %735 = vmatprep.mubr.msk.bf16.mxu0 %vm897_vm0, %v896_v0  ;;  %720 = vmatpush3.bf16.msra.mxu0 %v783_v55 }
  0x49   :  { %721 = vmatprep.subr.bf16.mxu0 %v896_v0 }
  0x4c   :  { %722 = vmatpush3.bf16.msra.mxu0 %v784_v56 }
  0x4d   :  { %723 = vmatprep.subr.bf16.mxu0 %v896_v0 }
  0x50   :  { %724 = vmatpush3.bf16.msra.mxu0 %v785_v57 }
  0x51   :  { %725 = vmatprep.subr.bf16.mxu0 %v896_v0 }
  0x54   :  { %726 = vmatpush3.bf16.msra.mxu0 %v786_v58 }
  0x55   :  { %727 = vmatprep.subr.bf16.mxu0 %v896_v0 }
  0x58   :  { %728 = vmatpush3.bf16.msra.mxu0 %v787_v59 }
  0x59   :  { %729 = vmatprep.subr.bf16.mxu0 %v896_v0 }
  0x5c   :  { %730 = vmatpush3.bf16.msra.mxu0 %v788_v60 }
  0x5d   :  { %731 = vmatprep.subr.bf16.mxu0 %v896_v0 }
  0x60   :  { %732 = vmatpush3.bf16.msra.mxu0 %v789_v61 }
  0x61   :  { %733 = vmatprep.subr.bf16.mxu0 %v896_v0 }
  0x64   :  { %734 = vmatpush3.bf16.msra.mxu0 %v790_v62 }
 0x107   :  { %v155_v19 = vpop.f32.mrf.mxu0 }
 0x108   :  { %v161_v20 = vrot.slane %v155_v19, 4  ;;  %v168_v21 = vmul.f32 %v155_v19, %v155_v19 }
 0x109   :  { %v697_v22 = vpop.f32.mrf.mxu0 }
 0x10a   :  { %v162_v23 = vadd.f32 %v161_v20, %v155_v19  ;;  %v169_v24 = vrot.slane %v168_v21, 4  ;;  %v195_v22 = vld [vmem:[#allocation7 + $0x2] sm:$0x1] }
 0x10b   :  { %v158_v25 = vpop.f32.mrf.mxu0 }
 0x10c   :  { %v163_v26 = vrot.slane %v162_v23, 2  ;;  %v170_v27 = vadd.f32 %v169_v24, %v168_v21 }
 0x10d   :  { %v698_v28 = vpop.f32.mrf.mxu0 }
 0x10e   :  { %v164_v29 = vadd.f32 %v163_v26, %v162_v23  ;;  %v171_v30 = vrot.slane %v170_v27, 2 }
 0x110   :  { %v165_v31 = vrot.slane %v164_v29, 1  ;;  %v172_v32 = vadd.f32 %v171_v30, %v170_v27  ;;  %v624_v27 = vld [vmem:[#allocation7 + $0x3] ss:$0 sm:$0xff] }
 0x112   :  { %v166_v33 = vadd.f32 %v165_v31, %v164_v29  ;;  %v173_v34 = vrot.slane %v172_v32, 1 }
 0x114   :  { %v167_v35 = vmul.f32 0.125, %v166_v33  ;;  %v174_v36 = vadd.f32 %v173_v34, %v172_v32  ;;  %v791_v33 = vld [vmem:[#allocation5 + $0xf8] sm:$0xff]   ;;  %v792_v34 = vld [vmem:[#allocation5 + $0xf0] sm:$0xff]  }
 0x116   :  { %v175_v37 = vmul.f32 0.125, %v174_v36  ;;  %v176_v38 = vmul.f32 %v167_v35, %v167_v35  ;;  %v181_v47 = vsub.f32 %v155_v19, %v167_v35  ;;  %v793_v35 = vld [vmem:[#allocation5 + $0xe8] sm:$0xff]   ;;  %v794_v36 = vld [vmem:[#allocation5 + $0xe0] sm:$0xff]  }
 0x118   :  { %v177_v39 = vsub.f32 %v175_v37, %v176_v38  ;;  %v795_v37 = vld [vmem:[#allocation5 + $0xd8] sm:$0xff]   ;;  %v796_v38 = vld [vmem:[#allocation5 + $0xd0] sm:$0xff]  }
 0x11a   :  { %v178_v40 = vadd.f32 1e-05, %v177_v39  ;;  %v797_v39 = vld [vmem:[#allocation5 + $0xc8] sm:$0xff]  }
 0x11c   :  { %799 = vrsqrt.f32 %v178_v40  ;;  %v798_v40 = vld [vmem:[#allocation5 + $0xc0] sm:$0xff]  }
 0x129   :  { %v800_v45 = vpop.eup %799 }
 0x12a   :  { %v180_v46 = vmul.f32 %v800_v45, %v54_v43 }
 0x12c   :  { %v185_v48 = vrot.slane %v180_v46, %v952_v44 }
 0x12e   :  { %v186_v50 = vmul.f32 %v185_v48, %v181_v47 }
 0x130   :  { %v191_v51 = vadd.f32 %v615_v49, %v186_v50 }
 0x132   :  { %vm192_vm1 = vcmp.ge.f32.partialorder %v191_v51, 0.0  ;;  %v193_v52 = vmul.f32 0.01, %v191_v51 }
 0x134   :  { %v194_v53 = vsel %vm192_vm1, %v191_v51, %v193_v52 }
 0x135   :  { %v197_v54 = vpack.c.bf16 %v194_v53, %v194_v53 }
 0x137   :  { %716 = vmatmul.mubr.bf16.vlgmr.msra.gmra.mxu1 %v197_v54 }
 0x138   :  { %755 = vmatprep.mubr.msk.bf16.mxu1 %vm897_vm0, %v896_v0  ;;  %740 = vmatpush3.bf16.msra.mxu1 %v791_v33 }
 0x139   :  { %741 = vmatprep.subr.bf16.mxu1 %v896_v0 }
 0x13c   :  { %742 = vmatpush3.bf16.msra.mxu1 %v792_v34 }
 0x13d   :  { %743 = vmatprep.subr.bf16.mxu1 %v896_v0 }
 0x140   :  { %744 = vmatpush3.bf16.msra.mxu1 %v793_v35 }
 0x141   :  { %745 = vmatprep.subr.bf16.mxu1 %v896_v0 }
 0x144   :  { %746 = vmatpush3.bf16.msra.mxu1 %v794_v36 }
 0x145   :  { %747 = vmatprep.subr.bf16.mxu1 %v896_v0 }
 0x148   :  { %748 = vmatpush3.bf16.msra.mxu1 %v795_v37 }
 0x149   :  { %749 = vmatprep.subr.bf16.mxu1 %v896_v0 }
 0x14c   :  { %750 = vmatpush3.bf16.msra.mxu1 %v796_v38 }
 0x14d   :  { %751 = vmatprep.subr.bf16.mxu1 %v896_v0 }
 0x150   :  { %752 = vmatpush3.bf16.msra.mxu1 %v797_v39 }
 0x151   :  { %753 = vmatprep.subr.bf16.mxu1 %v896_v0 }
 0x154   :  { %754 = vmatpush3.bf16.msra.mxu1 %v798_v40 }
 0x1f7   :  { %v297_v63 = vpop.f32.mrf.mxu1 }
 0x1f8   :  { %v303_v1 = vrot.slane %v297_v63, 4  ;;  %v310_v2 = vmul.f32 %v297_v63, %v297_v63 }
 0x1f9   :  { %v717_v3 = vpop.f32.mrf.mxu1 }
 0x1fa   :  { %v304_v4 = vadd.f32 %v303_v1, %v297_v63  ;;  %v311_v5 = vrot.slane %v310_v2, 4 }
 0x1fb   :  { %v300_v6 = vpop.f32.mrf.mxu1 }
 0x1fc   :  { %v305_v7 = vrot.slane %v304_v4, 2  ;;  %v312_v8 = vadd.f32 %v311_v5, %v310_v2  ;;  %v633_v5 = vld [vmem:[#allocation7 + $0x5] ss:$0 sm:$0xff] }
 0x1fd   :  { %v718_v9 = vpop.f32.mrf.mxu1 }
 0x1fe   :  { %v306_v10 = vadd.f32 %v305_v7, %v304_v4  ;;  %v313_v11 = vrot.slane %v312_v8, 2 }
 0x200   :  { %v307_v12 = vrot.slane %v306_v10, 1  ;;  %v314_v13 = vadd.f32 %v313_v11, %v312_v8  ;;  %v634_v11 = vld [vmem:[#allocation7 + $0x6] ss:$0 sm:$0xff] }
 0x202   :  { %v308_v14 = vadd.f32 %v307_v12, %v306_v10  ;;  %v315_v15 = vrot.slane %v314_v13, 1 }
 0x204   :  { %v309_v16 = vmul.f32 0.125, %v308_v14  ;;  %v316_v17 = vadd.f32 %v315_v15, %v314_v13 }
 0x206   :  { %v317_v18 = vmul.f32 0.125, %v316_v17  ;;  %v318_v19 = vmul.f32 %v309_v16, %v309_v16  ;;  %v323_v25 = vsub.f32 %v297_v63, %v309_v16  ;;  %v337_v63 = vld [vmem:[#allocation7 + $0x4] sm:$0x1] }
 0x208   :  { %v319_v20 = vsub.f32 %v317_v18, %v318_v19 }
 0x20a   :  { %v320_v21 = vadd.f32 1e-05, %v319_v20 }
 0x20c   :  { %801 = vrsqrt.f32 %v320_v21 }
 0x219   :  { %v802_v23 = vpop.eup %801 }
 0x21a   :  { %v322_v24 = vmul.f32 %v802_v23, %v195_v22 }
 0x21c   :  { %v327_v26 = vrot.slane %v322_v24, %v952_v44 }
 0x21e   :  { %v328_v28 = vmul.f32 %v327_v26, %v323_v25 }
 0x220   :  { %v333_v29 = vadd.f32 %v624_v27, %v328_v28 }
 0x222   :  { %vm334_vm2 = vcmp.ge.f32.partialorder %v333_v29, 0.0  ;;  %v335_v30 = vmul.f32 0.01, %v333_v29 }
 0x224   :  { %v336_v31 = vsel %vm334_vm2, %v333_v29, %v335_v30 }
 0x225   :  { %v339_v32 = vpack.c.bf16 %v336_v31, %v336_v31 }
 0x227   :  { %736 = vmatmul.mubr.bf16.vlgmr.msra.gmra.mxu0 %v339_v32 }
 0x2e7   :  { %v439_v41 = vpop.f32.mrf.mxu0 }
 0x2e8   :  { %v445_v42 = vrot.slane %v439_v41, 4  ;;  %v452_v43 = vmul.f32 %v439_v41, %v439_v41 }
 0x2e9   :  { %v737_v45 = vpop.f32.mrf.mxu0 }
 0x2ea   :  { %v446_v46 = vadd.f32 %v445_v42, %v439_v41  ;;  %v453_v47 = vrot.slane %v452_v43, 4 }
 0x2eb   :  { %v442_v48 = vpop.f32.mrf.mxu0 }
 0x2ec   :  { %v447_v49 = vrot.slane %v446_v46, 2  ;;  %v454_v50 = vadd.f32 %v453_v47, %v452_v43 }
 0x2ed   :  { %v738_v51 = vpop.f32.mrf.mxu0 }
 0x2ee   :  { %v448_v52 = vadd.f32 %v447_v49, %v446_v46  ;;  %v455_v53 = vrot.slane %v454_v50, 2 }
 0x2f0   :  { %v449_v54 = vrot.slane %v448_v52, 1  ;;  %v456_v55 = vadd.f32 %v455_v53, %v454_v50 }
 0x2f2   :  { %v450_v56 = vadd.f32 %v449_v54, %v448_v52  ;;  %v457_v57 = vrot.slane %v456_v55, 1 }
 0x2f4   :  { %v451_v58 = vmul.f32 0.125, %v450_v56  ;;  %v458_v59 = vadd.f32 %v457_v57, %v456_v55 }
 0x2f6   :  { %v459_v0 = vmul.f32 0.125, %v458_v59  ;;  %v460_v60 = vmul.f32 %v451_v58, %v451_v58  ;;  %v465_v3 = vsub.f32 %v439_v41, %v451_v58 }
 0x2f8   :  { %v461_v61 = vsub.f32 %v459_v0, %v460_v60 }
 0x2fa   :  { %v462_v62 = vadd.f32 1e-05, %v461_v61 }
 0x2fc   :  { %803 = vrsqrt.f32 %v462_v62 }
 0x309   :  { %v804_v1 = vpop.eup %803 }
 0x30a   :  { %v464_v2 = vmul.f32 %v804_v1, %v337_v63 }
 0x30c   :  { %v469_v4 = vrot.slane %v464_v2, %v952_v44 }
 0x30e   :  { %v470_v6 = vmul.f32 %v469_v4, %v465_v3 }
 0x310   :  { %v475_v7 = vadd.f32 %v633_v5, %v470_v6 }
 0x312   :  { %vm476_vm3 = vcmp.ge.f32.partialorder %v475_v7, 0.0  ;;  %v477_v8 = vmul.f32 0.01, %v475_v7 }
 0x314   :  { %v478_v9 = vsel %vm476_vm3, %v475_v7, %v477_v8 }
 0x315   :  { %v479_v10 = vpack.c.bf16 %v478_v9, %v478_v9 }
 0x317   :  { %756 = vmatmul.mubr.bf16.vlgmr.msra.gmra.mxu1 %v479_v10 }
 0x3d7   :  { %v584_v12 = vpop.f32.mrf.mxu1 }
 0x3d8   :  { %v585_v13 = vadd.f32 %v634_v11, %v584_v12 }
 0x3d9   :  { %v757_v14 = vpop.f32.mrf.mxu1 }
 0x3da   :  { %590 = vst [vmem:[#allocation8] sm:$0xff] %v585_v13 }
 0x3db   :  { %v587_v15 = vpop.f32.mrf.mxu1 }
 0x3dc   :  { %876 = shalt.err (!%p873_p5)
}
 0x3dd   :  { %600 = dma.vmem_to_hbm [thread:$0]  %s598_s2, 128, %s979_s3, [#allocation4]   ;;  %v758_v44 = vpop.f32.mrf.mxu1 }
 0x3de   :  { %889 = dma.done.wait [#allocation4], 128  }
 0x3df   :  { %890 = vsyncadd [#allocation4], 4294967168 }
 0x3e0   :  { %604 = vsyncpa [#allocation3], 1 }
 0x3e1   :  { %605 = vsyncpa [#allocation6], 1 }
 0x3e2   :  { %606 = vsyncpa [#allocation4], 1 }

</bundles_post_ra>
